<compile_context>
chip_gen: v5e
topology: v5e:2x2
jax: 0.10.0
libtpu: 0.0.40
codegen_flags: <defaults>
</compile_context>

<pallas_src>
import jax
import jax.numpy as jnp
import numpy as np
from jax import lax
from jax.experimental import pallas as pl
from jax.experimental.pallas import tpu as pltpu

HID1 = 64
HID2 = 32
OUT = 1


def _round_up(v, m):
    return -(-v // m) * m


def _mlp_kernel(x_ref, w1t_ref, b1_ref, w2t_ref, b2_ref, w3_ref, b3_ref, o_ref):
    compute_dtype = w1t_ref.dtype
    xb = x_ref[...].astype(compute_dtype)                       # (rows, d)

    # fc1 (transposed, NT matmul): (HID1, d) . (rows, d)^T -> (HID1, rows), MXU,
    # f32 accumulation.  Rows live on lanes, so garbage rows in a ragged last
    # tile never contaminate valid rows.
    h1 = lax.dot_general(
        w1t_ref[...], xb, (((1,), (1,)), ((), ())),
        preferred_element_type=jnp.float32)
    h1 = jnp.maximum(h1 + b1_ref[...], 0.0)                     # b1: (HID1, 1) bcast

    # fc2: (HID2, HID1) . (HID1, rows) -> (HID2, rows), MXU, f32 accumulation.
    h2 = jnp.dot(w2t_ref[...], h1.astype(compute_dtype),
                 preferred_element_type=jnp.float32)
    h2 = jnp.maximum(h2 + b2_ref[...], 0.0)                     # b2: (HID2, 1) bcast

    # fc3 (output width 1): VPU multiply + sublane reduction (XLU) instead of a
    # 1-wide MXU matmul; result is already lane-dense (1, rows).
    logits = jnp.sum(h2 * w3_ref[...], axis=0, keepdims=True) + b3_ref[...]
    o_ref[...] = jax.nn.sigmoid(logits).astype(o_ref.dtype)


def _choose_block_rows(n, d, x_itemsize, compute_itemsize, requested):
    """Pick the row tile.

    Auto mode: biggest 128-aligned tile whose x double buffer + in-kernel
    compute-dtype copy + intermediates fit a ~40 MiB budget (safe inside v7x's
    64 MiB/TC VMEM; trivially safe on v5e/v6e's 128 MiB), clamped to [256, 8192].
    If the whole batch fits in one tile, use block_rows == n exactly (single
    block whose dims equal the array dims — always a legal BlockSpec).
    """
    if requested is not None:
        br = max(_round_up(int(requested), 128), 128)
    else:
        budget = 40 * 1024 * 1024
        d_lanes = max(_round_up(d, 128), 128)     # x tile is lane-padded in VMEM
        bytes_per_row = (
            d_lanes * (2 * x_itemsize + compute_itemsize)  # x double buf + compute copy
            + (HID1 + HID2 + 2) * 4                        # f32 transposed intermediates
            + 2 * 4)                                       # output double buffer
        br = budget // bytes_per_row
        br = max(min(br, 8192), 256)
        br = (br // 128) * 128
    if br >= n:
        br = n            # single exact tile: block dims == array dims, no OOB at all
    return int(br)


def surrogate_model_forward(x, params, *, block_rows=None,
                            compute_dtype=jnp.bfloat16):
    """x: (N, input_dim) float -> (N, 1) float32 sigmoid probabilities.

    x may be float32 or bfloat16; passing bf16 halves HBM read traffic (the
    kernel is HBM-read-bound on x) — the cast to the matmul compute dtype
    happens in VMEM inside the kernel either way.
    """
    w1, b1, w2, b2, w3, b3 = params
    n, d = x.shape

    comp_bytes = jnp.dtype(compute_dtype).itemsize
    block_rows = _choose_block_rows(n, d, x.dtype.itemsize, comp_bytes, block_rows)
    num_blocks = pl.cdiv(n, block_rows)

    # Tiny weight plumbing into the transposed kernel layout (negligible cost).
    w1t = w1.T.astype(compute_dtype)                 # (HID1, d)
    w2t = w2.T.astype(compute_dtype)                 # (HID2, HID1)
    b1c = b1.reshape(HID1, 1).astype(jnp.float32)
    b2c = b2.reshape(HID2, 1).astype(jnp.float32)
    w3c = w3.reshape(HID2, OUT).astype(jnp.float32)
    b3c = b3.reshape(1, 1).astype(jnp.float32)

    in_specs = [
        pl.BlockSpec((block_rows, d), lambda i: (i, 0)),     # x row tile (streamed)
        pl.BlockSpec((HID1, d), lambda i: (0, 0)),           # w1^T (resident)
        pl.BlockSpec((HID1, 1), lambda i: (0, 0)),           # b1
        pl.BlockSpec((HID2, HID1), lambda i: (0, 0)),        # w2^T
        pl.BlockSpec((HID2, 1), lambda i: (0, 0)),           # b2
        pl.BlockSpec((HID2, OUT), lambda i: (0, 0)),         # w3 (column)
        pl.BlockSpec((1, 1), lambda i: (0, 0)),              # b3
    ]
    # Lane-dense output: one (1, block_rows) row vector per grid step; ragged
    # tail lanes are masked off by Pallas on writeback.
    out_specs = pl.BlockSpec((1, block_rows), lambda i: (0, i))

    # VMEM estimate with lane/sublane padding accounted for.  On the auto
    # block_rows path this stays <= ~45 MiB, so the resulting limit is safely
    # below v7x's 64 MiB/TC physical VMEM; the 100 MiB ceiling only matters for
    # explicit caller overrides on 128 MiB parts (v5e/v6e).
    d_lanes = max(_round_up(d, 128), 128)
    br_pad = max(_round_up(block_rows, 128), 128)
    vmem_est = (
        2 * br_pad * d_lanes * x.dtype.itemsize            # x input double buffer
        + br_pad * d_lanes * comp_bytes                    # in-kernel compute-dtype copy
        + 2 * HID1 * d_lanes * comp_bytes                  # w1^T double buffer
        + 2 * HID2 * 128 * comp_bytes                      # w2^T (lane-padded)
        + 2 * (HID1 + HID2 + 1 + 1) * 128 * 4              # biases / w3 (lane-padded)
        + 2 * br_pad * 4                                   # output double buffer
        + (HID1 + HID2 + 2) * br_pad * 4                   # h1, h2, logits intermediates
        + (2 << 20))                                       # regalloc / internal headroom
    vmem_limit = int(min(max(int(vmem_est * 1.25), 32 * 1024 * 1024),
                         100 * 1024 * 1024))

    out = pl.pallas_call(
        _mlp_kernel,
        out_shape=jax.ShapeDtypeStruct((1, n), jnp.float32),
        grid=(num_blocks,),
        in_specs=in_specs,
        out_specs=out_specs,
        compiler_params=pltpu.CompilerParams(
            dimension_semantics=("parallel",),
            vmem_limit_bytes=vmem_limit,
        ),
    )(x, w1t, b1c, w2t, b2c, w3c, b3c)

    return out.reshape(n, OUT)


def init_params(key, input_dim):
    """Deterministic synthetic init mimicking nn.Linear's U(-1/sqrt(fan_in), ...)."""
    ks = jax.random.split(key, 6)

    def linear_init(kw, kb, fan_in, fan_out):
        bound = 1.0 / np.sqrt(fan_in)
        w = jax.random.uniform(kw, (fan_in, fan_out), jnp.float32, -bound, bound)
        b = jax.random.uniform(kb, (fan_out,), jnp.float32, -bound, bound)
        return w, b

    w1, b1 = linear_init(ks[0], ks[1], input_dim, HID1)
    w2, b2 = linear_init(ks[2], ks[3], HID1, HID2)
    w3, b3 = linear_init(ks[4], ks[5], HID2, OUT)
    return (w1, b1, w2, b2, w3, b3)


def reference_forward_f32(x, params):
    w1, b1, w2, b2, w3, b3 = params
    h = jax.nn.relu(x @ w1 + b1)
    h = jax.nn.relu(h @ w2 + b2)
    return jax.nn.sigmoid(h @ w3 + b3)


def reference_forward_emulated(x, params, compute_dtype):
    """Same math as the kernel: bf16 matmul operands, f32 accumulation, f32 epilogue."""
    w1, b1, w2, b2, w3, b3 = params
    xb = x.astype(compute_dtype)
    h = jnp.dot(xb, w1.astype(compute_dtype),
                preferred_element_type=jnp.float32) + b1
    h = jax.nn.relu(h)
    h = jnp.dot(h.astype(compute_dtype), w2.astype(compute_dtype),
                preferred_element_type=jnp.float32) + b2
    h = jax.nn.relu(h)
    logits = jnp.sum(h * w3[:, 0], axis=-1, keepdims=True) + b3
    return jax.nn.sigmoid(logits)


if __name__ == "__main__":
    key = jax.random.PRNGKey(0)
    k_x, k_p, k_x2, k_p2 = jax.random.split(key, 4)

    # --- Primary small test: auto block_rows collapses to a single exact tile.
    batch, input_dim = 16, 32
    x = jax.random.normal(k_x, (batch, input_dim), jnp.float32)
    params = init_params(k_p, input_dim)

    out = jax.block_until_ready(surrogate_model_forward(x, params))

    # Tight check against a reference that emulates the kernel's numerics exactly
    # (bf16 matmul operands, f32 accumulation).
    ref_exact = reference_forward_emulated(x, params, jnp.bfloat16)
    np.testing.assert_allclose(np.asarray(out), np.asarray(ref_exact),
                               rtol=5e-3, atol=5e-4)
    # Looser sanity check against the pure-f32 PyTorch-equivalent semantics.
    ref_f32 = reference_forward_f32(x, params)
    np.testing.assert_allclose(np.asarray(out), np.asarray(ref_f32),
                               rtol=0.0, atol=5e-2)

    # --- Ragged multi-tile test: forces 3 grid steps with a partial last tile,
    # exercising the no-padding out-of-bounds read/masked-write path.
    batch2, input_dim2 = 300, 48
    x2 = jax.random.normal(k_x2, (batch2, input_dim2), jnp.float32)
    params2 = init_params(k_p2, input_dim2)

    out2 = jax.block_until_ready(
        surrogate_model_forward(x2, params2, block_rows=128))
    ref2 = reference_forward_emulated(x2, params2, jnp.bfloat16)
    np.testing.assert_allclose(np.asarray(out2), np.asarray(ref2),
                               rtol=5e-3, atol=5e-4)

    print("KERNEL_OK")
</pallas_src>

<mosaic_0001>
module attributes {stable_mosaic.version = 11 : i64} {
  func.func @_mlp_kernel(%arg0: i32, %arg1: memref<16x32xf32, #tpu.memory_space<vmem>>, %arg2: memref<64x32xbf16, #tpu.memory_space<vmem>>, %arg3: memref<64x1xf32, #tpu.memory_space<vmem>>, %arg4: memref<32x64xbf16, #tpu.memory_space<vmem>>, %arg5: memref<32x1xf32, #tpu.memory_space<vmem>>, %arg6: memref<32x1xf32, #tpu.memory_space<vmem>>, %arg7: memref<1x1xf32, #tpu.memory_space<vmem>>, %arg8: memref<1x16xf32, #tpu.memory_space<vmem>>) attributes {dimension_semantics = [#tpu.dimension_semantics<parallel>], iteration_bounds = array<i64: 1>, scalar_prefetch = 0 : i64, scratch_operands = 0 : i64, tpu.core_type = #tpu.core_type<tc>, window_params = [{transform_indices = @transform_0, window_bounds = array<i64: 16, 32>}, {pipeline_mode = #tpu.pipeline_mode<synchronous>, transform_indices = @transform_1, window_bounds = array<i64: 64, 32>}, {pipeline_mode = #tpu.pipeline_mode<synchronous>, transform_indices = @transform_2, window_bounds = array<i64: 64, 1>}, {pipeline_mode = #tpu.pipeline_mode<synchronous>, transform_indices = @transform_3, window_bounds = array<i64: 32, 64>}, {pipeline_mode = #tpu.pipeline_mode<synchronous>, transform_indices = @transform_4, window_bounds = array<i64: 32, 1>}, {pipeline_mode = #tpu.pipeline_mode<synchronous>, transform_indices = @transform_5, window_bounds = array<i64: 32, 1>}, {pipeline_mode = #tpu.pipeline_mode<synchronous>, transform_indices = @transform_6, window_bounds = array<i64: 1, 1>}, {transform_indices = @transform_7, window_bounds = array<i64: 1, 16>}]} {
    %c0 = arith.constant 0 : index
    %c0_0 = arith.constant 0 : index
    %0 = vector.load %arg1[%c0, %c0_0] : memref<16x32xf32, #tpu.memory_space<vmem>>, vector<16x32xf32>
    %1 = arith.truncf %0 : vector<16x32xf32> to vector<16x32xbf16>
    %c0_1 = arith.constant 0 : index
    %c0_2 = arith.constant 0 : index
    %2 = vector.load %arg2[%c0_1, %c0_2] : memref<64x32xbf16, #tpu.memory_space<vmem>>, vector<64x32xbf16>
    %cst = arith.constant dense<0.000000e+00> : vector<64x16xf32>
    %3 = tpu.matmul %2, %1, %cst {dimension_numbers = #tpu.dot_dimension_numbers<[1], [1], [0], [0], [0, 0, 1, 0], [], []>} : vector<64x32xbf16>, vector<16x32xbf16>, vector<64x16xf32> -> vector<64x16xf32>
    %c0_3 = arith.constant 0 : index
    %c0_4 = arith.constant 0 : index
    %4 = vector.load %arg3[%c0_3, %c0_4] : memref<64x1xf32, #tpu.memory_space<vmem>>, vector<64x1xf32>
    %5 = vector.broadcast %4 : vector<64x1xf32> to vector<64x16xf32>
    %6 = arith.addf %3, %5 : vector<64x16xf32>
    %cst_5 = arith.constant 0.000000e+00 : f32
    %7 = vector.broadcast %cst_5 : f32 to vector<64x16xf32>
    %8 = arith.maximumf %6, %7 : vector<64x16xf32>
    %c0_6 = arith.constant 0 : index
    %c0_7 = arith.constant 0 : index
    %9 = vector.load %arg4[%c0_6, %c0_7] : memref<32x64xbf16, #tpu.memory_space<vmem>>, vector<32x64xbf16>
    %10 = arith.truncf %8 : vector<64x16xf32> to vector<64x16xbf16>
    %cst_8 = arith.constant dense<0.000000e+00> : vector<32x16xf32>
    %11 = tpu.matmul %9, %10, %cst_8 {dimension_numbers = #tpu.dot_dimension_numbers<[1], [0], [0], [1], [0, 0, 1, 1], [], []>} : vector<32x64xbf16>, vector<64x16xbf16>, vector<32x16xf32> -> vector<32x16xf32>
    %c0_9 = arith.constant 0 : index
    %c0_10 = arith.constant 0 : index
    %12 = vector.load %arg5[%c0_9, %c0_10] : memref<32x1xf32, #tpu.memory_space<vmem>>, vector<32x1xf32>
    %13 = vector.broadcast %12 : vector<32x1xf32> to vector<32x16xf32>
    %14 = arith.addf %11, %13 : vector<32x16xf32>
    %cst_11 = arith.constant 0.000000e+00 : f32
    %15 = vector.broadcast %cst_11 : f32 to vector<32x16xf32>
    %16 = arith.maximumf %14, %15 : vector<32x16xf32>
    %c0_12 = arith.constant 0 : index
    %c0_13 = arith.constant 0 : index
    %17 = vector.load %arg6[%c0_12, %c0_13] : memref<32x1xf32, #tpu.memory_space<vmem>>, vector<32x1xf32>
    %18 = vector.broadcast %17 : vector<32x1xf32> to vector<32x16xf32>
    %19 = arith.mulf %16, %18 : vector<32x16xf32>
    %cst_14 = arith.constant dense<0.000000e+00> : vector<16xf32>
    %20 = vector.multi_reduction <add>, %19, %cst_14 [0] : vector<32x16xf32> to vector<16xf32>
    %21 = vector.shape_cast %20 : vector<16xf32> to vector<1x16xf32>
    %c0_15 = arith.constant 0 : index
    %c0_16 = arith.constant 0 : index
    %22 = vector.load %arg7[%c0_15, %c0_16] : memref<1x1xf32, #tpu.memory_space<vmem>>, vector<1x1xf32>
    %23 = vector.broadcast %22 : vector<1x1xf32> to vector<1x16xf32>
    %24 = arith.addf %21, %23 : vector<1x16xf32>
    %25 = arith.negf %24 : vector<1x16xf32>
    %26 = math.exp %25 : vector<1x16xf32>
    %cst_17 = arith.constant 1.000000e+00 : f32
    %27 = vector.broadcast %cst_17 : f32 to vector<1x16xf32>
    %28 = arith.addf %27, %26 : vector<1x16xf32>
    %29 = arith.divf %27, %28 : vector<1x16xf32>
    %c0_18 = arith.constant 0 : index
    %c0_19 = arith.constant 0 : index
    %30 = vector.load %arg8[%c0_18, %c0_19] : memref<1x16xf32, #tpu.memory_space<vmem>>, vector<1x16xf32>
    tpu.vector_store %arg8[%c0_18, %c0_19], %29 {strides = array<i32>} : memref<1x16xf32, #tpu.memory_space<vmem>>, vector<1x16xf32>,
    return
  }
  func.func @transform_0(%arg0: i32) -> (i32, i32) {
    %c0_i32 = arith.constant 0 : i32
    %c0_i32_0 = arith.constant 0 : i32
    return %arg0, %c0_i32 : i32, i32
  }
  func.func @transform_1(%arg0: i32) -> (i32, i32) {
    %c0_i32 = arith.constant 0 : i32
    %c0_i32_0 = arith.constant 0 : i32
    %c0_i32_1 = arith.constant 0 : i32
    return %c0_i32, %c0_i32_0 : i32, i32
  }
  func.func @transform_2(%arg0: i32) -> (i32, i32) {
    %c0_i32 = arith.constant 0 : i32
    %c0_i32_0 = arith.constant 0 : i32
    %c0_i32_1 = arith.constant 0 : i32
    return %c0_i32, %c0_i32_0 : i32, i32
  }
  func.func @transform_3(%arg0: i32) -> (i32, i32) {
    %c0_i32 = arith.constant 0 : i32
    %c0_i32_0 = arith.constant 0 : i32
    %c0_i32_1 = arith.constant 0 : i32
    return %c0_i32, %c0_i32_0 : i32, i32
  }
  func.func @transform_4(%arg0: i32) -> (i32, i32) {
    %c0_i32 = arith.constant 0 : i32
    %c0_i32_0 = arith.constant 0 : i32
    %c0_i32_1 = arith.constant 0 : i32
    return %c0_i32, %c0_i32_0 : i32, i32
  }
  func.func @transform_5(%arg0: i32) -> (i32, i32) {
    %c0_i32 = arith.constant 0 : i32
    %c0_i32_0 = arith.constant 0 : i32
    %c0_i32_1 = arith.constant 0 : i32
    return %c0_i32, %c0_i32_0 : i32, i32
  }
  func.func @transform_6(%arg0: i32) -> (i32, i32) {
    %c0_i32 = arith.constant 0 : i32
    %c0_i32_0 = arith.constant 0 : i32
    %c0_i32_1 = arith.constant 0 : i32
    return %c0_i32, %c0_i32_0 : i32, i32
  }
  func.func @transform_7(%arg0: i32) -> (i32, i32) {
    %c0_i32 = arith.constant 0 : i32
    %c0_i32_0 = arith.constant 0 : i32
    return %c0_i32, %arg0 : i32, i32
  }
}

</mosaic_0001>

<bundles_post_ra>
// kernel: tpu_custom_call.1
= control target key start
LH: loop header
LB: loop body
LE: loop exit
PB: predicated region body
PF: predicated region fallthrough
CT: control target
= control target key end

     0   :  { %s523_s0 = inlined_call_operand.vmem [shape: f32[16,32], index: 0, kind: input, shape index: {}]   ;;  %s524_s1 = inlined_call_operand.vmem [shape: bf16[64,32], index: 1, kind: input, shape index: {}]   ;;  %s525_s2 = inlined_call_operand.vmem [shape: f32[64,1], index: 2, kind: input, shape index: {}]   ;;  %s526_s3 = inlined_call_operand.vmem [shape: bf16[32,64], index: 3, kind: input, shape index: {}]   ;;  %s527_s4 = inlined_call_operand.vmem [shape: f32[32,1], index: 4, kind: input, shape index: {}]   ;;  %s528_s5 = inlined_call_operand.vmem [shape: f32[32,1], index: 5, kind: input, shape index: {}]   ;;  %s529_s6 = inlined_call_operand.<no memory space> [shape: f32[1,1], index: 6, kind: input, shape index: {}]   ;;  %s530_s7 = inlined_call_operand.hbm [shape: f32[1,16], index: 7, kind: output, shape index: {}]  }
   0x1   :  { %v12_v0 = vstv %s529_s6 }
   0x2   :  { %13 = vst [vmem:[#allocation2] sm:$0x1] %v12_v0 }
   0x3   :  { %v47_v1 = vld [vmem:[%s525_s2 + $0x30] sm:$0xff]  ;;  %v30_v2 = vld [vmem:[%s523_s0] sm:$0xff]  ;;  %v31_v3 = vld [vmem:[%s523_s0 + $0x8] sm:$0xff]  ;;  %vm109_vm0 = vcmask 261120   ;;  %v398_v4 = vmov 0  }
   0x4   :  { %365 = vset.pattern.permute.xlu0 %v398_v4  ;;  %v32_v5 = vpack.c.bf16 %v31_v3, %v30_v2  ;;  %366 = vset.pattern.permute.xlu1 %v398_v4  ;;  %v45_v6 = vld [vmem:[%s525_s2 + $0x20] sm:$0xff]  ;;  %v43_v8 = vld [vmem:[%s525_s2 + $0x10] sm:$0xff] }
   0x5   :  { %81 = vperm.xlu0 %365, %v47_v1   ;;  %71 = vperm.xlu1 %366, %v45_v6   ;;  %v354_v9 = vld [vmem:[%s524_s1 + $0x10] sm:$0xff] }
   0x6   :  { %v123_v7 = vsel %vm109_vm0, %v32_v5, 0  ;;  %367 = vset.pattern.permute.xlu2 %v398_v4 }
   0x7   :  { %358 = vmatpush.bf16.xpose.msra.mxu2 %v123_v7  ;;  %132 = vmatpush.bf16.xpose.msra.mxu0 %v123_v7 }
   0x8   :  { %61 = vperm.xlu2 %367, %v43_v8  }
   0x9   :  { %14 = vsyncpa [#allocation4], 0  ;;  %v48_v10 = vld [vmem:[%s525_s2 + $0x38] sm:$0xff]  ;;  %v46_v11 = vld [vmem:[%s525_s2 + $0x28] sm:$0xff]  ;;  %vm204_vm1 = vcmask 523264   ;;  %vm262_vm2 = vcmask 130048  }
   0xa   :  { %v352_v12 = vld [vmem:[%s524_s1] sm:$0xff]  ;;  %v44_v13 = vld [vmem:[%s525_s2 + $0x18] sm:$0xff]  ;;  %v42_v15 = vld [vmem:[%s525_s2 + $0x8] sm:$0xff]  ;;  %s312_s23 = sshll.u32 %s530_s7, 4  ;;  %vm303_vm6 = vcmask 122880   ;;  %s313_s23 = int_to_ptr.hbm [resolvable:$true] %s312_s23 }
   0xb   :  { %v41_v14 = vld [vmem:[%s525_s2] sm:$0xff]  ;;  %v355_v17 = vld [vmem:[%s524_s1 + $0x18] sm:$0xff]  ;;  %v171_v18 = vld [vmem:[%s527_s4 + $0x8] sm:$0xff] }
   0xc   :  { %v170_v16 = vld [vmem:[%s527_s4] sm:$0xff]  ;;  %v172_v19 = vld [vmem:[%s527_s4 + $0x10] sm:$0xff]  ;;  %v353_v20 = vld [vmem:[%s524_s1 + $0x8] sm:$0xff] }
   0xd   :  { %86 = vperm.xlu0 %365, %v48_v10   ;;  %76 = vperm.xlu1 %366, %v46_v11   ;;  %v173_v21 = vld [vmem:[%s527_s4 + $0x18] sm:$0xff]  ;;  %v234_v22 = vld [vmem:[%s528_s5] sm:$0xff]  ;;  %v235_v23 = vld [vmem:[%s528_s5 + $0x8] sm:$0xff] }
   0xe   :  { %339 = vmatmul.msk.bf16.vlgmr.msra.gmra.mxu2 %vm109_vm0, %v354_v9  ;;  %337 = vmatmul.msk.bf16.vlgmr.msra.gmra.mxu0 %vm109_vm0, %v352_v12  ;;  %v236_v24 = vld [vmem:[%s528_s5 + $0x10] sm:$0xff]  ;;  %v237_v25 = vld [vmem:[%s528_s5 + $0x18] sm:$0xff]  ;;  %v276_v26 = vld [vmem:[#allocation2] sm:$0x1] }
   0xf   :  { %v356_v63 = vld [vmem:[%s526_s3] sm:$0xff]  ;;  %v357_v0 = vld [vmem:[%s526_s3 + $0x8] sm:$0xff]  ;;  %s399_s3 = smov [#allocation3]  }
  0x10   :  { %66 = vperm.xlu2 %367, %v44_v13   ;;  %s310_s20 = sshll.u32 %s399_s3, 4  ;;  %s311_s20 = int_to_ptr.vmem [resolvable:$true] %s310_s20 }
  0x15   :  { %51 = vperm.xlu0 %365, %v41_v14   ;;  %56 = vperm.xlu1 %366, %v42_v15  }
  0x18   :  { %176 = vperm.xlu2 %367, %v170_v16  }
  0x1d   :  { %181 = vperm.xlu0 %365, %v171_v18   ;;  %186 = vperm.xlu1 %366, %v172_v19  }
  0x1e   :  { %340 = vmatmul.msk.bf16.gmra.mxu2 %vm109_vm0, %v355_v17  ;;  %338 = vmatmul.msk.bf16.gmra.mxu0 %vm109_vm0, %v353_v20 }
  0x20   :  { %191 = vperm.xlu2 %367, %v173_v21  }
  0x25   :  { %240 = vperm.xlu0 %365, %v234_v22   ;;  %245 = vperm.xlu1 %366, %v235_v23  }
  0x28   :  { %250 = vperm.xlu2 %367, %v236_v24  }
  0x2d   :  { %255 = vperm.xlu0 %365, %v237_v25   ;;  %279 = vperm.xlu1 %366, %v276_v26  }
  0x62   :  { %v62_v35 = vpop.permute.xlu2 %61 }
  0x6a   :  { %v67_v46 = vpop.permute.xlu2 %66 }
  0x72   :  { %v177_v1 = vpop.permute.xlu2 %176 }
  0x77   :  { %v82_v31 = vpop.permute.xlu0 %81  ;;  %v72_v32 = vpop.permute.xlu1 %71 }
  0x7a   :  { %v192_v6 = vpop.permute.xlu2 %191 }
  0x7f   :  { %v87_v36 = vpop.permute.xlu0 %86  ;;  %v77_v37 = vpop.permute.xlu1 %76 }
  0x82   :  { %v251_v18 = vpop.permute.xlu2 %250 }
  0x87   :  { %v52_v51 = vpop.permute.xlu0 %51  ;;  %v57_v53 = vpop.permute.xlu1 %56 }
  0x8b   :  { %v134_v27 = vpop.f32.mrf.mxu0 }
  0x8c   :  { %v135_v54 = vadd.f32 %v134_v27, %v52_v51 }
  0x8e   :  { %v154_v59 = vmax.f32 %v135_v54, 0.0 }
  0x8f   :  { %v182_v2 = vpop.permute.xlu0 %181  ;;  %v187_v4 = vpop.permute.xlu1 %186 }
  0x91   :  { %v144_v28 = vpop.f32.mrf.mxu2 }
  0x92   :  { %v145_v43 = vadd.f32 %v144_v28, %v72_v32 }
  0x93   :  { %v136_v29 = vpop.f32.mrf.mxu0 }
  0x94   :  { %v158_v52 = vmax.f32 %v145_v43, 0.0  ;;  %v137_v55 = vadd.f32 %v136_v29, %v57_v53 }
  0x96   :  { %v155_v60 = vmax.f32 %v137_v55, 0.0 }
  0x97   :  { %v241_v10 = vpop.permute.xlu0 %240  ;;  %v246_v16 = vpop.permute.xlu1 %245 }
  0x98   :  { %v166_v62 = vpack.c.bf16 %v155_v60, %v154_v59 }
  0x99   :  { %v146_v30 = vpop.f32.mrf.mxu2 }
  0x9a   :  { %v147_v40 = vadd.f32 %v146_v30, %v77_v37 }
  0x9b   :  { %v139_v33 = vpop.f32.mrf.mxu0 }
  0x9c   :  { %v159_v47 = vmax.f32 %v147_v40, 0.0  ;;  %v140_v48 = vadd.f32 %v139_v33, %v62_v35 }
  0x9e   :  { %v156_v56 = vmax.f32 %v140_v48, 0.0  ;;  %v168_v58 = vpack.c.bf16 %v159_v47, %v158_v52 }
  0x9f   :  { %v256_v26 = vpop.permute.xlu0 %255 }
  0xa1   :  { %v149_v34 = vpop.f32.mrf.mxu2 }
  0xa2   :  { %v150_v38 = vadd.f32 %v149_v34, %v82_v31 }
  0xa3   :  { %v141_v42 = vpop.f32.mrf.mxu0 }
  0xa4   :  { %v160_v44 = vmax.f32 %v150_v38, 0.0  ;;  %v142_v49 = vadd.f32 %v141_v42, %v67_v46 }
  0xa6   :  { %v157_v57 = vmax.f32 %v142_v49, 0.0 }
  0xa8   :  { %v167_v61 = vpack.c.bf16 %v157_v57, %v156_v56 }
  0xa9   :  { %v151_v39 = vpop.f32.mrf.mxu2 }
  0xaa   :  { %v152_v41 = vadd.f32 %v151_v39, %v87_v36  ;;  %v280_v36 = vpop.permute.xlu1 %279 }
  0xab   :  { %v282_v38 = vperm.slane %v280_v36, 0 }
  0xac   :  { %v161_v45 = vmax.f32 %v152_v41, 0.0 }
  0xae   :  { %v169_v50 = vpack.c.bf16 %v161_v45, %v160_v44 }
  0xb0   :  { %215 = vmatpush.bf16.msra.mxu1 %v169_v50  ;;  %359 = vmatpush.bf16.msra.mxu3 %v169_v50 }
  0xb4   :  { %216 = vmatpush.bf16.msra.mxu1 %v168_v58  ;;  %360 = vmatpush.bf16.msra.mxu3 %v168_v58 }
  0xb8   :  { %217 = vmatpush.bf16.msra.mxu1 %v167_v61  ;;  %361 = vmatpush.bf16.msra.mxu3 %v167_v61 }
  0xbc   :  { %218 = vmatpush.bf16.msra.mxu1 %v166_v62  ;;  %362 = vmatpush.bf16.msra.mxu3 %v166_v62 }
  0xbf   :  { %349 = vmatmul.msk.bf16.vlgmr.msra.gmra.mxu1 %vm204_vm1, %v356_v63  ;;  %350 = vmatmul.msk.bf16.vlgmr.msra.gmra.mxu3 %vm204_vm1, %v357_v0 }
 0x13c   :  { %v220_v3 = vpop.f32.mrf.mxu1 }
 0x13d   :  { %v221_v5 = vadd.f32 %v220_v3, %v177_v1 }
 0x13f   :  { %v230_v8 = vmax.f32 %v221_v5, 0.0 }
 0x141   :  { %v258_v13 = vmul.f32 %v241_v10, %v230_v8 }
 0x142   :  { %v225_v7 = vpop.f32.mrf.mxu3 }
 0x143   :  { %v226_v9 = vadd.f32 %v225_v7, %v187_v4  ;;  %v263_v20 = vsel %vm262_vm2, %v258_v13, 0.0 }
 0x144   :  { %v222_v11 = vpop.f32.mrf.mxu1 }
 0x145   :  { %v223_v12 = vadd.f32 %v222_v11, %v182_v2  ;;  %v232_v14 = vmax.f32 %v226_v9, 0.0 }
 0x147   :  { %v231_v15 = vmax.f32 %v223_v12, 0.0  ;;  %v260_v21 = vmul.f32 %v251_v18, %v232_v14 }
 0x149   :  { %v259_v17 = vmul.f32 %v246_v16, %v231_v15  ;;  %v266_v27 = vsel %vm262_vm2, %v260_v21, 0.0 }
 0x14a   :  { %v227_v19 = vpop.f32.mrf.mxu3 }
 0x14b   :  { %v264_v22 = vsel %vm262_vm2, %v259_v17, 0.0  ;;  %v228_v23 = vadd.f32 %v227_v19, %v192_v6 }
 0x14c   :  { %v265_v24 = vadd.f32 %v264_v22, %v263_v20 }
 0x14d   :  { %v233_v25 = vmax.f32 %v228_v23, 0.0 }
 0x14e   :  { %v267_v29 = vadd.f32 %v266_v27, %v265_v24 }
 0x14f   :  { %v261_v28 = vmul.f32 %v256_v26, %v233_v25 }
 0x151   :  { %v268_v30 = vsel %vm262_vm2, %v261_v28, 0.0 }
 0x152   :  { %v269_v31 = vadd.f32 %v268_v30, %v267_v29 }
 0x154   :  { %v270_v32 = vrot.slane %v269_v31, 4 }
 0x156   :  { %v271_v33 = vadd.f32 %v270_v32, %v269_v31 }
 0x158   :  { %v272_v34 = vrot.slane %v271_v33, 2 }
 0x15a   :  { %v273_v35 = vadd.f32 %v272_v34, %v271_v33 }
 0x15c   :  { %v274_v37 = vrot.slane %v273_v35, 1 }
 0x15e   :  { %v275_v39 = vadd.f32 %v274_v37, %v273_v35 }
 0x160   :  { %v283_v40 = vadd.f32 %v282_v38, %v275_v39 }
 0x162   :  { %v351_v41 = vmul.f32 -1.442695, %v283_v40 }
 0x164   :  { %368 = vpow2.f32 %v351_v41 }
 0x16a   :  { %v369_v42 = vpop.eup %368 }
 0x16b   :  { %v287_v43 = vadd.f32 1.0, %v369_v42 }
 0x16d   :  { %370 = vrcp.f32 %v287_v43  ;;  %v299_v47 = vand.u32 2147483648, %v287_v43  ;;  %v297_v49 = vand.u32 2147483647, %v287_v43  ;;  %vm293_vm4 = vweird.f32 %v287_v43 }
 0x16f   :  { %v300_v51 = vor.u32 1.1754944e-38, %v299_v47  ;;  %vm298_vm7 = vcmp.eq.f32.partialorder %v297_v49, 8.507059e+37 }
 0x173   :  { %v371_v44 = vpop.eup %370 }
 0x174   :  { %v289_v45 = vmul.f32 %v371_v44, %v287_v43  ;;  %vm294_vm3 = vweird.f32 %v371_v44 }
 0x175   :  { %vm295_vm5 = vmor %vm293_vm4, %vm294_vm3 }
 0x176   :  { %v290_v46 = vsub.f32 1.0, %v289_v45 }
 0x178   :  { %v291_v48 = vmul.f32 %v371_v44, %v290_v46 }
 0x17a   :  { %v292_v50 = vadd.f32 %v371_v44, %v291_v48 }
 0x17c   :  { %v296_v52 = vsel %vm295_vm5, %v371_v44, %v292_v50 }
 0x17d   :  { %v301_v53 = vsel %vm298_vm7, %v300_v51, %v296_v52 }
 0x17e   :  { %304 = vst.msk [vmem:[#allocation3] sm:$0x1] %vm303_vm6, %v301_v53 }
 0x17f   :  { %315 = dma.vmem_to_hbm [thread:$0]  %s311_s20, 16, %s313_s23, [#allocation4]  }
 0x180   :  { %396 = dma.done.wait [#allocation4], 16  }
 0x181   :  { %397 = vsyncadd [#allocation4], 4294967280 }
 0x182   :  { %320 = vsyncpa [#allocation4], 1 }

</bundles_post_ra>
